<compile_context>
chip_gen: v6e
topology: v6e:2x2x1
jax: 0.10.0
libtpu: 0.0.40
codegen_flags: <defaults>
</compile_context>

<pallas_src>
import functools

import numpy as np
import jax
import jax.numpy as jnp
from jax.experimental import pallas as pl
from jax.experimental.pallas import tpu as pltpu

_VMEM = pl.BlockSpec(memory_space=pltpu.MemorySpace.VMEM)


# ------------------------------ tiling helper -------------------------------

def _choose_tile(P, max_tile=512):
    """Pixel-tile size: divides P, multiple of 8 when tiling (VMEM-safe on v7x)."""
    if P <= max_tile:
        return P
    for t in range(max_tile, 7, -8):
        if P % t == 0:
            return t
    return P


# ----------------------------- Pallas kernels -------------------------------

def _patch_conv_gap_kernel(patches_ref, w_ref, b_ref, f_ref, fsum_ref):
    # patches_ref: (1, TILE_P, C*64) bf16, w_ref: (C*64, E) bf16, b_ref: (1, E) f32
    t = pl.program_id(1)
    acc = jnp.dot(patches_ref[0], w_ref[...], preferred_element_type=jnp.float32)
    acc = jnp.maximum(acc + b_ref[...], 0.0)              # (TILE_P, E) f32
    f_ref[0] = acc.astype(f_ref.dtype)
    part = jnp.sum(acc, axis=0, keepdims=True)            # sublane reduction -> (1, E)

    @pl.when(t == 0)
    def _init():
        fsum_ref[0] = part

    @pl.when(t > 0)
    def _accum():
        fsum_ref[0] = fsum_ref[0] + part


def _pooled_contrib_kernel(fsum_ref, pw_ref, pb_ref, bwp_ref, bb_ref, pc_ref, *, inv_p):
    # pc[n] = relu(mean_pixels(f[n]) @ pool_w + pool_b) @ bott_w_pool + bott_b
    mean = fsum_ref[...] * inv_p                                           # (N, E)
    hdn = jnp.dot(mean, pw_ref[...], preferred_element_type=jnp.float32) + pb_ref[...]
    hdn = jnp.maximum(hdn, 0.0)
    pc = jnp.dot(hdn, bwp_ref[...], preferred_element_type=jnp.float32) + bb_ref[...]
    pc_ref[...] = pc.astype(pc_ref.dtype)


def _bottleneck_cls_kernel(f_ref, pc_ref, bwm_ref, cw_ref, cb_ref, o_ref):
    # f_ref: (1, TILE_P, E) bf16; pc_ref: (1, 1, Bn) f32 (per-image additive term)
    f = f_ref[0]
    feats = jnp.dot(f, bwm_ref[...], preferred_element_type=jnp.float32)
    feats = jnp.maximum(feats + pc_ref[0], 0.0)                            # (TILE_P, Bn)
    logits = jnp.dot(feats.astype(cw_ref.dtype), cw_ref[...],
                     preferred_element_type=jnp.float32) + cb_ref[...]     # (TILE_P, K)
    o_ref[0] = logits.T.astype(o_ref.dtype)                                # (K, TILE_P)


def _upsample_kernel(l_ref, rh_ref, rwt_ref, o_ref):
    # per (image, class): Rh @ L @ Rw^T, written straight into NCHW output.
    # TODO(synk): for very small h,w a VPU gather+lerp would beat the MXU here.
    t = jnp.dot(rh_ref[...], l_ref[0, 0], preferred_element_type=jnp.float32)   # (H, w)
    o_ref[0, 0] = jnp.dot(t, rwt_ref[...],
                          preferred_element_type=jnp.float32).astype(o_ref.dtype)


# --------------------------- pallas_call wrappers ---------------------------

def patch_conv_gap(patches, patch_w, patch_b, tile_p):
    N, P, C64 = patches.shape
    E = patch_w.shape[1]
    T = P // tile_p
    return pl.pallas_call(
        _patch_conv_gap_kernel,
        grid=(N, T),
        in_specs=[
            pl.BlockSpec((1, tile_p, C64), lambda n, t: (n, t, 0)),
            pl.BlockSpec((C64, E), lambda n, t: (0, 0)),
            pl.BlockSpec((1, E), lambda n, t: (0, 0)),
        ],
        out_specs=[
            pl.BlockSpec((1, tile_p, E), lambda n, t: (n, t, 0)),
            pl.BlockSpec((1, 1, E), lambda n, t: (n, 0, 0)),   # revisited accumulator
        ],
        out_shape=[
            jax.ShapeDtypeStruct((N, P, E), jnp.bfloat16),
            jax.ShapeDtypeStruct((N, 1, E), jnp.float32),
        ],
        compiler_params=pltpu.CompilerParams(
            dimension_semantics=("parallel", "arbitrary")),
    )(patches, patch_w, patch_b)


def pooled_contrib(fsum, pool_w, pool_b, bott_w_pool, bott_b, inv_p):
    N = fsum.shape[0]
    Bn = bott_w_pool.shape[1]
    return pl.pallas_call(
        functools.partial(_pooled_contrib_kernel, inv_p=inv_p),
        out_shape=jax.ShapeDtypeStruct((N, Bn), jnp.float32),
        in_specs=[_VMEM] * 5,
        out_specs=_VMEM,
    )(fsum, pool_w, pool_b, bott_w_pool, bott_b)


def bottleneck_classify(f, pc, bott_w_main, cls_w, cls_b, tile_p):
    N, P, E = f.shape
    Bn = bott_w_main.shape[1]
    K = cls_w.shape[1]
    T = P // tile_p
    return pl.pallas_call(
        _bottleneck_cls_kernel,
        grid=(N, T),
        in_specs=[
            pl.BlockSpec((1, tile_p, E), lambda n, t: (n, t, 0)),
            pl.BlockSpec((1, 1, Bn), lambda n, t: (n, 0, 0)),
            pl.BlockSpec((E, Bn), lambda n, t: (0, 0)),
            pl.BlockSpec((Bn, K), lambda n, t: (0, 0)),
            pl.BlockSpec((1, K), lambda n, t: (0, 0)),
        ],
        out_specs=pl.BlockSpec((1, K, tile_p), lambda n, t: (n, 0, t)),
        out_shape=jax.ShapeDtypeStruct((N, K, P), jnp.float32),
        compiler_params=pltpu.CompilerParams(
            dimension_semantics=("parallel", "parallel")),
    )(f, pc, bott_w_main, cls_w, cls_b)


def bilinear_upsample_nchw(logits8_nkhw, Rh, Rw_T):
    N, K, h, w = logits8_nkhw.shape
    H = Rh.shape[0]
    W = Rw_T.shape[1]
    return pl.pallas_call(
        _upsample_kernel,
        grid=(N, K),
        in_specs=[
            pl.BlockSpec((1, 1, h, w), lambda n, k: (n, k, 0, 0)),
            pl.BlockSpec((H, h), lambda n, k: (0, 0)),
            pl.BlockSpec((w, W), lambda n, k: (0, 0)),
        ],
        out_specs=pl.BlockSpec((1, 1, H, W), lambda n, k: (n, k, 0, 0)),
        out_shape=jax.ShapeDtypeStruct((N, K, H, W), jnp.float32),
        compiler_params=pltpu.CompilerParams(
            dimension_semantics=("parallel", "parallel")),
    )(logits8_nkhw, Rh, Rw_T)


# ------------------------------ glue helpers --------------------------------

def interp_matrix_np(out_size, in_size):
    """Bilinear row-interp matrix (out_size, in_size), align_corners=True (numpy, trace-time)."""
    if in_size == 1:
        return np.ones((out_size, 1), np.float32)
    if out_size == 1:
        src = np.zeros((1,), np.float64)
    else:
        src = np.arange(out_size, dtype=np.float64) * (in_size - 1) / (out_size - 1)
    i0 = np.clip(np.floor(src).astype(np.int64), 0, in_size - 1)
    i1 = np.minimum(i0 + 1, in_size - 1)
    frac = (src - i0).astype(np.float32)
    R = np.zeros((out_size, in_size), np.float32)
    R[np.arange(out_size), i0] += 1.0 - frac
    R[np.arange(out_size), i1] += frac
    return R


def init_params(key, c_in, enc_dim, pool_dim, bottleneck_dim, classes):
    ks = jax.random.split(key, 5)

    def scaled(k, shape):
        return jax.random.normal(k, shape, jnp.float32) / jnp.sqrt(float(shape[0]))

    return {
        # 8x8 stride-8 "patch" conv, weight flattened as (C_in*kh*kw, enc_dim)
        "patch_w": scaled(ks[0], (c_in * 64, enc_dim)).astype(jnp.bfloat16),
        "patch_b": jnp.zeros((1, enc_dim), jnp.float32),
        # PSP global-pool branch 1x1 conv
        "pool_w": scaled(ks[1], (enc_dim, pool_dim)),
        "pool_b": jnp.zeros((1, pool_dim), jnp.float32),
        # bottleneck 1x1 conv, split weights (replaces concat): [W_main; W_pool]
        "bott_w_main": scaled(ks[2], (enc_dim, bottleneck_dim)).astype(jnp.bfloat16),
        "bott_w_pool": scaled(ks[3], (pool_dim, bottleneck_dim)),
        "bott_b": jnp.zeros((1, bottleneck_dim), jnp.float32),
        # classifier 1x1 conv
        "cls_w": scaled(ks[4], (bottleneck_dim, classes)).astype(jnp.bfloat16),
        "cls_b": jnp.zeros((1, classes), jnp.float32),
    }


# ------------------------------- forward pass --------------------------------

def pspnet_forward(params, x):
    """x: (N, C, H, W) float32 NCHW.  Returns logits (N, classes, H, W) float32."""
    N, C, H, W = x.shape
    assert H % 8 == 0 and W % 8 == 0
    h, w = H // 8, W // 8
    P = h * w
    tile_p = _choose_tile(P)

    # patchify: NCHW -> (N, P, C*64), bf16 operands for the MXU.
    # TODO(synk): this relayout could be absorbed into the patch-conv kernel via
    # a windowed index_map; kept in XLA since the input is the smallest tensor.
    patches = (x.astype(jnp.bfloat16)
                 .reshape(N, C, h, 8, w, 8)
                 .transpose(0, 2, 4, 1, 3, 5)
                 .reshape(N, P, C * 64))

    # fused patch conv + ReLU + per-image pixel-sum (GAP numerator)
    f, fsum = patch_conv_gap(patches, params["patch_w"], params["patch_b"], tile_p)

    # PSP global-pool branch folded into a tiny per-image additive vector
    pc = pooled_contrib(fsum.reshape(N, -1), params["pool_w"], params["pool_b"],
                        params["bott_w_pool"], params["bott_b"], 1.0 / float(P))
    pc = pc.reshape(N, 1, -1)

    # fused bottleneck + classifier -> stride-8 logits, channels-first (N, K, P)
    logits8 = bottleneck_classify(f, pc, params["bott_w_main"],
                                  params["cls_w"], params["cls_b"], tile_p)
    K = logits8.shape[1]

    # bilinear upsample to (H, W), align_corners=True, fused separable matmuls,
    # output written directly in NCHW with W as the lane dimension.
    Rh = jnp.asarray(interp_matrix_np(H, h))
    Rw_T = jnp.asarray(interp_matrix_np(W, w).T)
    out = bilinear_upsample_nchw(logits8.reshape(N, K, h, w), Rh, Rw_T)
    return out


# ---------------------------------- main -------------------------------------

if __name__ == "__main__":
    key = jax.random.PRNGKey(0)
    k_par, k_x = jax.random.split(key)

    # small, forward-consistent shapes
    N, C, H, W = 2, 3, 16, 16          # H, W multiples of 8
    classes = 4
    enc_dim, pool_dim, bottleneck_dim = 32, 16, 32

    params = init_params(k_par, C, enc_dim, pool_dim, bottleneck_dim, classes)
    x = jax.random.normal(k_x, (N, C, H, W), jnp.float32)

    out = jax.jit(pspnet_forward)(params, x)
    out = jax.block_until_ready(out)

    assert out.shape == (N, classes, H, W), out.shape
    assert bool(jnp.all(jnp.isfinite(out)))
    print("KERNEL_OK")
</pallas_src>

<mosaic_0001>
module attributes {stable_mosaic.version = 11 : i64} {
  func.func @_patch_conv_gap_kernel(%arg0: i32, %arg1: i32, %arg2: memref<1x4x192xbf16, #tpu.memory_space<vmem>>, %arg3: memref<192x32xbf16, #tpu.memory_space<vmem>>, %arg4: memref<1x32xf32, #tpu.memory_space<vmem>>, %arg5: memref<1x4x32xbf16, #tpu.memory_space<vmem>>, %arg6: memref<1x1x32xf32, #tpu.memory_space<vmem>>) attributes {dimension_semantics = [#tpu.dimension_semantics<parallel>, #tpu.dimension_semantics<arbitrary>], iteration_bounds = array<i64: 2, 1>, scalar_prefetch = 0 : i64, scratch_operands = 0 : i64, tpu.core_type = #tpu.core_type<tc>, window_params = [{transform_indices = @transform_0, window_bounds = array<i64: 1, 4, 192>}, {pipeline_mode = #tpu.pipeline_mode<synchronous>, transform_indices = @transform_1, window_bounds = array<i64: 192, 32>}, {pipeline_mode = #tpu.pipeline_mode<synchronous>, transform_indices = @transform_2, window_bounds = array<i64: 1, 32>}, {transform_indices = @transform_3, window_bounds = array<i64: 1, 4, 32>}, {transform_indices = @transform_4, window_bounds = array<i64: 1, 1, 32>}]} {
    %c0 = arith.constant 0 : index
    %c0_0 = arith.constant 0 : index
    %c0_1 = arith.constant 0 : index
    %0 = vector.load %arg2[%c0, %c0_0, %c0_1] : memref<1x4x192xbf16, #tpu.memory_space<vmem>>, vector<1x4x192xbf16>
    %1 = vector.shape_cast %0 : vector<1x4x192xbf16> to vector<4x192xbf16>
    %c0_2 = arith.constant 0 : index
    %c0_3 = arith.constant 0 : index
    %2 = vector.load %arg3[%c0_2, %c0_3] : memref<192x32xbf16, #tpu.memory_space<vmem>>, vector<192x32xbf16>
    %cst = arith.constant dense<0.000000e+00> : vector<4x32xf32>
    %3 = tpu.matmul %1, %2, %cst {dimension_numbers = #tpu.dot_dimension_numbers<[1], [0], [0], [1], [0, 0, 1, 1], [], []>} : vector<4x192xbf16>, vector<192x32xbf16>, vector<4x32xf32> -> vector<4x32xf32>
    %c0_4 = arith.constant 0 : index
    %c0_5 = arith.constant 0 : index
    %4 = vector.load %arg4[%c0_4, %c0_5] : memref<1x32xf32, #tpu.memory_space<vmem>>, vector<1x32xf32>
    %5 = vector.broadcast %4 : vector<1x32xf32> to vector<4x32xf32>
    %6 = arith.addf %3, %5 : vector<4x32xf32>
    %cst_6 = arith.constant 0.000000e+00 : f32
    %7 = vector.broadcast %cst_6 : f32 to vector<4x32xf32>
    %8 = arith.maximumf %6, %7 : vector<4x32xf32>
    %9 = arith.truncf %8 : vector<4x32xf32> to vector<4x32xbf16>
    %c0_7 = arith.constant 0 : index
    %c0_8 = arith.constant 0 : index
    %c0_9 = arith.constant 0 : index
    %10 = vector.load %arg5[%c0_7, %c0_8, %c0_9] : memref<1x4x32xbf16, #tpu.memory_space<vmem>>, vector<1x4x32xbf16>
    %11 = vector.shape_cast %10 : vector<1x4x32xbf16> to vector<4x32xbf16>
    %12 = vector.shape_cast %9 : vector<4x32xbf16> to vector<1x4x32xbf16>
    tpu.vector_store %arg5[%c0_7, %c0_8, %c0_9], %12 {strides = array<i32>} : memref<1x4x32xbf16, #tpu.memory_space<vmem>>, vector<1x4x32xbf16>,
    %cst_10 = arith.constant dense<0.000000e+00> : vector<32xf32>
    %13 = vector.multi_reduction <add>, %8, %cst_10 [0] : vector<4x32xf32> to vector<32xf32>
    %14 = vector.shape_cast %13 : vector<32xf32> to vector<1x32xf32>
    %c0_i32 = arith.constant 0 : i32
    %15 = arith.cmpi eq, %arg1, %c0_i32 : i32
    %16 = arith.extui %15 : i1 to i32
    %c0_i32_11 = arith.constant 0 : i32
    %17 = arith.cmpi ne, %16, %c0_i32_11 : i32
    scf.if %17 {
      %c0_14 = arith.constant 0 : index
      %c0_15 = arith.constant 0 : index
      %c0_16 = arith.constant 0 : index
      %21 = vector.load %arg6[%c0_14, %c0_15, %c0_16] : memref<1x1x32xf32, #tpu.memory_space<vmem>>, vector<1x1x32xf32>
      %22 = vector.shape_cast %21 : vector<1x1x32xf32> to vector<1x32xf32>
      %23 = vector.shape_cast %14 : vector<1x32xf32> to vector<1x1x32xf32>
      tpu.vector_store %arg6[%c0_14, %c0_15, %c0_16], %23 {strides = array<i32>} : memref<1x1x32xf32, #tpu.memory_space<vmem>>, vector<1x1x32xf32>,
    } else {
    }
    %c0_i32_12 = arith.constant 0 : i32
    %18 = arith.cmpi sgt, %arg1, %c0_i32_12 : i32
    %19 = arith.extui %18 : i1 to i32
    %c0_i32_13 = arith.constant 0 : i32
    %20 = arith.cmpi ne, %19, %c0_i32_13 : i32
    scf.if %20 {
      %c0_14 = arith.constant 0 : index
      %c0_15 = arith.constant 0 : index
      %c0_16 = arith.constant 0 : index
      %21 = vector.load %arg6[%c0_14, %c0_15, %c0_16] : memref<1x1x32xf32, #tpu.memory_space<vmem>>, vector<1x1x32xf32>
      %22 = vector.shape_cast %21 : vector<1x1x32xf32> to vector<1x32xf32>
      %23 = arith.addf %22, %14 : vector<1x32xf32>
      %c0_17 = arith.constant 0 : index
      %c0_18 = arith.constant 0 : index
      %c0_19 = arith.constant 0 : index
      %24 = vector.load %arg6[%c0_17, %c0_18, %c0_19] : memref<1x1x32xf32, #tpu.memory_space<vmem>>, vector<1x1x32xf32>
      %25 = vector.shape_cast %24 : vector<1x1x32xf32> to vector<1x32xf32>
      %26 = vector.shape_cast %23 : vector<1x32xf32> to vector<1x1x32xf32>
      tpu.vector_store %arg6[%c0_17, %c0_18, %c0_19], %26 {strides = array<i32>} : memref<1x1x32xf32, #tpu.memory_space<vmem>>, vector<1x1x32xf32>,
    } else {
    }
    return
  }
  func.func @transform_0(%arg0: i32, %arg1: i32) -> (i32, i32, i32) {
    %c0_i32 = arith.constant 0 : i32
    %c0_i32_0 = arith.constant 0 : i32
    return %arg0, %arg1, %c0_i32 : i32, i32, i32
  }
  func.func @transform_1(%arg0: i32, %arg1: i32) -> (i32, i32) {
    %c0_i32 = arith.constant 0 : i32
    %c0_i32_0 = arith.constant 0 : i32
    %c0_i32_1 = arith.constant 0 : i32
    return %c0_i32, %c0_i32_0 : i32, i32
  }
  func.func @transform_2(%arg0: i32, %arg1: i32) -> (i32, i32) {
    %c0_i32 = arith.constant 0 : i32
    %c0_i32_0 = arith.constant 0 : i32
    %c0_i32_1 = arith.constant 0 : i32
    return %c0_i32, %c0_i32_0 : i32, i32
  }
  func.func @transform_3(%arg0: i32, %arg1: i32) -> (i32, i32, i32) {
    %c0_i32 = arith.constant 0 : i32
    %c0_i32_0 = arith.constant 0 : i32
    return %arg0, %arg1, %c0_i32 : i32, i32, i32
  }
  func.func @transform_4(%arg0: i32, %arg1: i32) -> (i32, i32, i32) {
    %c0_i32 = arith.constant 0 : i32
    %c0_i32_0 = arith.constant 0 : i32
    %c0_i32_1 = arith.constant 0 : i32
    return %arg0, %c0_i32, %c0_i32_0 : i32, i32, i32
  }
}

module attributes {stable_mosaic.version = 11 : i64} {
  func.func @_pooled_contrib_kernel(%arg0: memref<2x32xf32, #tpu.memory_space<vmem>>, %arg1: memref<32x16xf32, #tpu.memory_space<vmem>>, %arg2: memref<1x16xf32, #tpu.memory_space<vmem>>, %arg3: memref<16x32xf32, #tpu.memory_space<vmem>>, %arg4: memref<1x32xf32, #tpu.memory_space<vmem>>, %arg5: memref<2x32xf32, #tpu.memory_space<vmem>>) attributes {dimension_semantics = [], scalar_prefetch = 0 : i64, scratch_operands = 0 : i64, tpu.core_type = #tpu.core_type<tc>} {
    %c0 = arith.constant 0 : index
    %c0_0 = arith.constant 0 : index
    %0 = vector.load %arg0[%c0, %c0_0] : memref<2x32xf32, #tpu.memory_space<vmem>>, vector<2x32xf32>
    %cst = arith.constant 2.500000e-01 : f32
    %1 = vector.broadcast %cst : f32 to vector<2x32xf32>
    %2 = arith.mulf %0, %1 : vector<2x32xf32>
    %c0_1 = arith.constant 0 : index
    %c0_2 = arith.constant 0 : index
    %3 = vector.load %arg1[%c0_1, %c0_2] : memref<32x16xf32, #tpu.memory_space<vmem>>, vector<32x16xf32>
    %cst_3 = arith.constant dense<0.000000e+00> : vector<2x16xf32>
    %4 = tpu.matmul %2, %3, %cst_3 {dimension_numbers = #tpu.dot_dimension_numbers<[1], [0], [0], [1], [0, 0, 1, 1], [], []>} : vector<2x32xf32>, vector<32x16xf32>, vector<2x16xf32> -> vector<2x16xf32>
    %c0_4 = arith.constant 0 : index
    %c0_5 = arith.constant 0 : index
    %5 = vector.load %arg2[%c0_4, %c0_5] : memref<1x16xf32, #tpu.memory_space<vmem>>, vector<1x16xf32>
    %6 = vector.broadcast %5 : vector<1x16xf32> to vector<2x16xf32>
    %7 = arith.addf %4, %6 : vector<2x16xf32>
    %cst_6 = arith.constant 0.000000e+00 : f32
    %8 = vector.broadcast %cst_6 : f32 to vector<2x16xf32>
    %9 = arith.maximumf %7, %8 : vector<2x16xf32>
    %c0_7 = arith.constant 0 : index
    %c0_8 = arith.constant 0 : index
    %10 = vector.load %arg3[%c0_7, %c0_8] : memref<16x32xf32, #tpu.memory_space<vmem>>, vector<16x32xf32>
    %cst_9 = arith.constant dense<0.000000e+00> : vector<2x32xf32>
    %11 = tpu.matmul %9, %10, %cst_9 {dimension_numbers = #tpu.dot_dimension_numbers<[1], [0], [0], [1], [0, 0, 1, 1], [], []>} : vector<2x16xf32>, vector<16x32xf32>, vector<2x32xf32> -> vector<2x32xf32>
    %c0_10 = arith.constant 0 : index
    %c0_11 = arith.constant 0 : index
    %12 = vector.load %arg4[%c0_10, %c0_11] : memref<1x32xf32, #tpu.memory_space<vmem>>, vector<1x32xf32>
    %13 = vector.broadcast %12 : vector<1x32xf32> to vector<2x32xf32>
    %14 = arith.addf %11, %13 : vector<2x32xf32>
    %c0_12 = arith.constant 0 : index
    %c0_13 = arith.constant 0 : index
    %15 = vector.load %arg5[%c0_12, %c0_13] : memref<2x32xf32, #tpu.memory_space<vmem>>, vector<2x32xf32>
    tpu.vector_store %arg5[%c0_12, %c0_13], %14 {strides = array<i32>} : memref<2x32xf32, #tpu.memory_space<vmem>>, vector<2x32xf32>,
    return
  }
}

module attributes {stable_mosaic.version = 11 : i64} {
  func.func @_bottleneck_cls_kernel(%arg0: i32, %arg1: i32, %arg2: memref<1x4x32xbf16, #tpu.memory_space<vmem>>, %arg3: memref<1x1x32xf32, #tpu.memory_space<vmem>>, %arg4: memref<32x32xbf16, #tpu.memory_space<vmem>>, %arg5: memref<32x4xbf16, #tpu.memory_space<vmem>>, %arg6: memref<1x4xf32, #tpu.memory_space<vmem>>, %arg7: memref<1x4x4xf32, #tpu.memory_space<vmem>>) attributes {dimension_semantics = [#tpu.dimension_semantics<parallel>, #tpu.dimension_semantics<parallel>], iteration_bounds = array<i64: 2, 1>, scalar_prefetch = 0 : i64, scratch_operands = 0 : i64, tpu.core_type = #tpu.core_type<tc>, window_params = [{transform_indices = @transform_0, window_bounds = array<i64: 1, 4, 32>}, {transform_indices = @transform_1, window_bounds = array<i64: 1, 1, 32>}, {pipeline_mode = #tpu.pipeline_mode<synchronous>, transform_indices = @transform_2, window_bounds = array<i64: 32, 32>}, {pipeline_mode = #tpu.pipeline_mode<synchronous>, transform_indices = @transform_3, window_bounds = array<i64: 32, 4>}, {pipeline_mode = #tpu.pipeline_mode<synchronous>, transform_indices = @transform_4, window_bounds = array<i64: 1, 4>}, {transform_indices = @transform_5, window_bounds = array<i64: 1, 4, 4>}]} {
    %c0 = arith.constant 0 : index
    %c0_0 = arith.constant 0 : index
    %c0_1 = arith.constant 0 : index
    %0 = vector.load %arg2[%c0, %c0_0, %c0_1] : memref<1x4x32xbf16, #tpu.memory_space<vmem>>, vector<1x4x32xbf16>
    %1 = vector.shape_cast %0 : vector<1x4x32xbf16> to vector<4x32xbf16>
    %c0_2 = arith.constant 0 : index
    %c0_3 = arith.constant 0 : index
    %2 = vector.load %arg4[%c0_2, %c0_3] : memref<32x32xbf16, #tpu.memory_space<vmem>>, vector<32x32xbf16>
    %cst = arith.constant dense<0.000000e+00> : vector<4x32xf32>
    %3 = tpu.matmul %1, %2, %cst {dimension_numbers = #tpu.dot_dimension_numbers<[1], [0], [0], [1], [0, 0, 1, 1], [], []>} : vector<4x32xbf16>, vector<32x32xbf16>, vector<4x32xf32> -> vector<4x32xf32>
    %c0_4 = arith.constant 0 : index
    %c0_5 = arith.constant 0 : index
    %c0_6 = arith.constant 0 : index
    %4 = vector.load %arg3[%c0_4, %c0_5, %c0_6] : memref<1x1x32xf32, #tpu.memory_space<vmem>>, vector<1x1x32xf32>
    %5 = vector.shape_cast %4 : vector<1x1x32xf32> to vector<1x32xf32>
    %6 = vector.broadcast %5 : vector<1x32xf32> to vector<4x32xf32>
    %7 = arith.addf %3, %6 : vector<4x32xf32>
    %cst_7 = arith.constant 0.000000e+00 : f32
    %8 = vector.broadcast %cst_7 : f32 to vector<4x32xf32>
    %9 = arith.maximumf %7, %8 : vector<4x32xf32>
    %10 = arith.truncf %9 : vector<4x32xf32> to vector<4x32xbf16>
    %c0_8 = arith.constant 0 : index
    %c0_9 = arith.constant 0 : index
    %11 = vector.load %arg5[%c0_8, %c0_9] : memref<32x4xbf16, #tpu.memory_space<vmem>>, vector<32x4xbf16>
    %cst_10 = arith.constant dense<0.000000e+00> : vector<4x4xf32>
    %12 = tpu.matmul %10, %11, %cst_10 {dimension_numbers = #tpu.dot_dimension_numbers<[1], [0], [0], [1], [0, 0, 1, 1], [], []>} : vector<4x32xbf16>, vector<32x4xbf16>, vector<4x4xf32> -> vector<4x4xf32>
    %c0_11 = arith.constant 0 : index
    %c0_12 = arith.constant 0 : index
    %13 = vector.load %arg6[%c0_11, %c0_12] : memref<1x4xf32, #tpu.memory_space<vmem>>, vector<1x4xf32>
    %14 = vector.broadcast %13 : vector<1x4xf32> to vector<4x4xf32>
    %15 = arith.addf %12, %14 : vector<4x4xf32>
    %16 = tpu.transpose %15, [1, 0] : vector<4x4xf32> -> vector<4x4xf32>
    %c0_13 = arith.constant 0 : index
    %c0_14 = arith.constant 0 : index
    %c0_15 = arith.constant 0 : index
    %17 = vector.load %arg7[%c0_13, %c0_14, %c0_15] : memref<1x4x4xf32, #tpu.memory_space<vmem>>, vector<1x4x4xf32>
    %18 = vector.shape_cast %17 : vector<1x4x4xf32> to vector<4x4xf32>
    %19 = vector.shape_cast %16 : vector<4x4xf32> to vector<1x4x4xf32>
    tpu.vector_store %arg7[%c0_13, %c0_14, %c0_15], %19 {strides = array<i32>} : memref<1x4x4xf32, #tpu.memory_space<vmem>>, vector<1x4x4xf32>,
    return
  }
  func.func @transform_0(%arg0: i32, %arg1: i32) -> (i32, i32, i32) {
    %c0_i32 = arith.constant 0 : i32
    %c0_i32_0 = arith.constant 0 : i32
    return %arg0, %arg1, %c0_i32 : i32, i32, i32
  }
  func.func @transform_1(%arg0: i32, %arg1: i32) -> (i32, i32, i32) {
    %c0_i32 = arith.constant 0 : i32
    %c0_i32_0 = arith.constant 0 : i32
    %c0_i32_1 = arith.constant 0 : i32
    return %arg0, %c0_i32, %c0_i32_0 : i32, i32, i32
  }
  func.func @transform_2(%arg0: i32, %arg1: i32) -> (i32, i32) {
    %c0_i32 = arith.constant 0 : i32
    %c0_i32_0 = arith.constant 0 : i32
    %c0_i32_1 = arith.constant 0 : i32
    return %c0_i32, %c0_i32_0 : i32, i32
  }
  func.func @transform_3(%arg0: i32, %arg1: i32) -> (i32, i32) {
    %c0_i32 = arith.constant 0 : i32
    %c0_i32_0 = arith.constant 0 : i32
    %c0_i32_1 = arith.constant 0 : i32
    return %c0_i32, %c0_i32_0 : i32, i32
  }
  func.func @transform_4(%arg0: i32, %arg1: i32) -> (i32, i32) {
    %c0_i32 = arith.constant 0 : i32
    %c0_i32_0 = arith.constant 0 : i32
    %c0_i32_1 = arith.constant 0 : i32
    return %c0_i32, %c0_i32_0 : i32, i32
  }
  func.func @transform_5(%arg0: i32, %arg1: i32) -> (i32, i32, i32) {
    %c0_i32 = arith.constant 0 : i32
    %c0_i32_0 = arith.constant 0 : i32
    return %arg0, %c0_i32, %arg1 : i32, i32, i32
  }
}

module attributes {stable_mosaic.version = 11 : i64} {
  func.func @_upsample_kernel(%arg0: i32, %arg1: i32, %arg2: memref<1x1x2x2xf32, #tpu.memory_space<vmem>>, %arg3: memref<16x2xf32, #tpu.memory_space<vmem>>, %arg4: memref<2x16xf32, #tpu.memory_space<vmem>>, %arg5: memref<1x1x16x16xf32, #tpu.memory_space<vmem>>) attributes {dimension_semantics = [#tpu.dimension_semantics<parallel>, #tpu.dimension_semantics<parallel>], iteration_bounds = array<i64: 2, 4>, scalar_prefetch = 0 : i64, scratch_operands = 0 : i64, tpu.core_type = #tpu.core_type<tc>, window_params = [{transform_indices = @transform_0, window_bounds = array<i64: 1, 1, 2, 2>}, {pipeline_mode = #tpu.pipeline_mode<synchronous>, transform_indices = @transform_1, window_bounds = array<i64: 16, 2>}, {pipeline_mode = #tpu.pipeline_mode<synchronous>, transform_indices = @transform_2, window_bounds = array<i64: 2, 16>}, {transform_indices = @transform_3, window_bounds = array<i64: 1, 1, 16, 16>}]} {
    %c0 = arith.constant 0 : index
    %c0_0 = arith.constant 0 : index
    %0 = vector.load %arg3[%c0, %c0_0] : memref<16x2xf32, #tpu.memory_space<vmem>>, vector<16x2xf32>
    %c0_1 = arith.constant 0 : index
    %c0_2 = arith.constant 0 : index
    %c0_3 = arith.constant 0 : index
    %c0_4 = arith.constant 0 : index
    %1 = vector.load %arg2[%c0_1, %c0_2, %c0_3, %c0_4] : memref<1x1x2x2xf32, #tpu.memory_space<vmem>>, vector<1x1x2x2xf32>
    %2 = vector.shape_cast %1 : vector<1x1x2x2xf32> to vector<2x2xf32>
    %cst = arith.constant dense<0.000000e+00> : vector<16x2xf32>
    %3 = tpu.matmul %0, %2, %cst {dimension_numbers = #tpu.dot_dimension_numbers<[1], [0], [0], [1], [0, 0, 1, 1], [], []>} : vector<16x2xf32>, vector<2x2xf32>, vector<16x2xf32> -> vector<16x2xf32>
    %c0_5 = arith.constant 0 : index
    %c0_6 = arith.constant 0 : index
    %4 = vector.load %arg4[%c0_5, %c0_6] : memref<2x16xf32, #tpu.memory_space<vmem>>, vector<2x16xf32>
    %cst_7 = arith.constant dense<0.000000e+00> : vector<16x16xf32>
    %5 = tpu.matmul %3, %4, %cst_7 {dimension_numbers = #tpu.dot_dimension_numbers<[1], [0], [0], [1], [0, 0, 1, 1], [], []>} : vector<16x2xf32>, vector<2x16xf32>, vector<16x16xf32> -> vector<16x16xf32>
    %c0_8 = arith.constant 0 : index
    %c0_9 = arith.constant 0 : index
    %c0_10 = arith.constant 0 : index
    %c0_11 = arith.constant 0 : index
    %6 = vector.load %arg5[%c0_8, %c0_9, %c0_10, %c0_11] : memref<1x1x16x16xf32, #tpu.memory_space<vmem>>, vector<1x1x16x16xf32>
    %7 = vector.shape_cast %6 : vector<1x1x16x16xf32> to vector<16x16xf32>
    %8 = vector.shape_cast %5 : vector<16x16xf32> to vector<1x1x16x16xf32>
    tpu.vector_store %arg5[%c0_8, %c0_9, %c0_10, %c0_11], %8 {strides = array<i32>} : memref<1x1x16x16xf32, #tpu.memory_space<vmem>>, vector<1x1x16x16xf32>,
    return
  }
  func.func @transform_0(%arg0: i32, %arg1: i32) -> (i32, i32, i32, i32) {
    %c0_i32 = arith.constant 0 : i32
    %c0_i32_0 = arith.constant 0 : i32
    %c0_i32_1 = arith.constant 0 : i32
    return %arg0, %arg1, %c0_i32, %c0_i32_0 : i32, i32, i32, i32
  }
  func.func @transform_1(%arg0: i32, %arg1: i32) -> (i32, i32) {
    %c0_i32 = arith.constant 0 : i32
    %c0_i32_0 = arith.constant 0 : i32
    %c0_i32_1 = arith.constant 0 : i32
    return %c0_i32, %c0_i32_0 : i32, i32
  }
  func.func @transform_2(%arg0: i32, %arg1: i32) -> (i32, i32) {
    %c0_i32 = arith.constant 0 : i32
    %c0_i32_0 = arith.constant 0 : i32
    %c0_i32_1 = arith.constant 0 : i32
    return %c0_i32, %c0_i32_0 : i32, i32
  }
  func.func @transform_3(%arg0: i32, %arg1: i32) -> (i32, i32, i32, i32) {
    %c0_i32 = arith.constant 0 : i32
    %c0_i32_0 = arith.constant 0 : i32
    %c0_i32_1 = arith.constant 0 : i32
    return %arg0, %arg1, %c0_i32, %c0_i32_0 : i32, i32, i32, i32
  }
}

</mosaic_0001>

<bundles_post_ra>
// kernel: pspnet_forward.4
= control target key start
LH: loop header
LB: loop body
LE: loop exit
PB: predicated region body
PF: predicated region fallthrough
CT: control target
= control target key end

     0   :  { %s642_s15 = smov 0   ;;  %s644_s16 = smov 0   ;;  %s722_s0 = inlined_call_operand.vmem [shape: bf16[2,4,192], index: 0, kind: input, shape index: {}]   ;;  %s723_s1 = inlined_call_operand.vmem [shape: bf16[192,32], index: 1, kind: input, shape index: {}]   ;;  %s724_s2 = inlined_call_operand.vmem [shape: f32[1,32], index: 2, kind: input, shape index: {}]   ;;  %s725_s3 = inlined_call_operand.vmem [shape: bf16[2,4,32], index: 3, kind: output, shape index: {0}]   ;;  %s726_s4 = inlined_call_operand.vmem [shape: f32[2,1,32], index: 4, kind: output, shape index: {1}]  }
   0x1   :  { %s646_s17 = smov 0  }
   0x2 LB: > { %s27_s18 = sadd.s32 1, %s610_s16  ;;  %p533_p0 = scmp.ge.s32.totalorder %s614_s17, 1  ;;  %s614_s17 = sphi %s646_s17, %s15_s17   ;;  %s610_s16 = sphi %s644_s16, %s728_s16   ;;  %s606_s15 = sphi %s642_s15, %s727_s15  }
   0x3   : > { %p29_p1 = scmp.ge.s32.totalorder %s27_s18, 2  ;;  %p185_p2 = scmp.lt.s32.totalorder %s614_s17, 3 }
   0x5   : > { %s730_s18 = smov (%p29_p1, %s27_s18), 0  ;;  %p186_p3 = pnand %p533_p0, %p185_p2 }
   0x6   : > { %p220_p4 = scmp.lt.s32.totalorder (!%p186_p3), %s606_s15, 1 }
   0x7   : > { %189 = sbr.rel (%p186_p3) target bundleno = 272 (0x110), region = 32 }
   0xc   : > { %v580_v0 = vld [vmem:[%s723_s1 + $0x38] sm:$0xff]   ;;  %v616_v1 = vmov 0   ;;  %v581_v2 = vld [vmem:[%s723_s1 + $0x30] sm:$0xff]   ;;  %s732_s15 = smov (!%p220_p4, %s606_s15), 1  ;;  %v582_v3 = vld [vmem:[%s723_s1 + $0x28] sm:$0xff]   ;;  %vm354_vm0 = vcmask 523264  }
   0xd   : > { %358 = vmatprep.subr.bf16.mxu0 %v616_v1  ;;  %s554_s25 = sshll.u32 %s732_s15, 2  ;;  %v583_v4 = vld [vmem:[%s723_s1 + $0x20] sm:$0xff]   ;;  %v584_v7 = vld [vmem:[%s723_s1 + $0x18] sm:$0xff]   ;;  %v585_v8 = vld [vmem:[%s723_s1 + $0x10] sm:$0xff]   ;;  %s536_s27 = sshll.u32 %s732_s15, 1  ;;  %vm402_vm1 = vcmask 257024  }
   0xe   : > { %359 = vmatpush1.bf16.msra.mxu0 %v580_v0  ;;  %s228_s28 = scalar_lea.vmem %s722_s0, %s554_s25  ;;  %v586_v9 = vld [vmem:[%s723_s1 + $0x8] sm:$0xff]   ;;  %v587_v10 = vld [vmem:[%s723_s1] sm:$0xff]   ;;  %v588_v11 = vld [vmem:[%s723_s1 + $0x58] sm:$0xff]   ;;  %s235_s30 = scalar_lea.vmem %s725_s3, %s536_s27  ;;  %vm400_vm2 = vcmask 254976   ;;  %vm414_vm3 = vcmask 253952  }
   0xf   : > { %360 = vmatprep.subr.bf16.mxu0 %v616_v1  ;;  %v538_v5 = vld.sshfl [vmem:[%s228_s28] sm:$0x33 pattern:$0x76325410]  ;;  %v589_v12 = vld [vmem:[%s723_s1 + $0x50] sm:$0xff]   ;;  %v590_v13 = vld [vmem:[%s723_s1 + $0x48] sm:$0xff]   ;;  %s238_s7 = scalar_lea.vmem %s726_s4, %s732_s15 }
  0x10   : > { %v280_v6 = vcombine.high %v538_v5, %v538_v5  ;;  %v591_v14 = vld [vmem:[%s723_s1 + $0x40] sm:$0xff]  }
  0x11   : > { %v537_v15 = vld [vmem:[%s724_s2] ss:$0 sm:$0xff] }
  0x12   : > { %361 = vmatpush1.bf16.msra.mxu0 %v581_v2  ;;  %551 = vmatprep.mubr.msk.bf16.mxu0 %vm354_vm0, %v280_v6 }
  0x13   : > { %362 = vmatprep.subr.bf16.mxu0 %v616_v1 }
  0x16   : > { %363 = vmatpush1.bf16.msra.mxu0 %v582_v3 }
  0x17   : > { %364 = vmatprep.subr.bf16.mxu0 %v616_v1 }
  0x1a   : > { %365 = vmatpush1.bf16.msra.mxu0 %v583_v4 }
  0x1b   : > { %366 = vmatprep.subr.bf16.mxu0 %v616_v1 }
  0x1e   : > { %367 = vmatpush1.bf16.msra.mxu0 %v584_v7 }
  0x1f   : > { %368 = vmatprep.subr.bf16.mxu0 %v616_v1 }
  0x22   : > { %369 = vmatpush1.bf16.msra.mxu0 %v585_v8 }
  0x23   : > { %370 = vmatprep.subr.bf16.mxu0 %v616_v1 }
  0x26   : > { %371 = vmatpush1.bf16.msra.mxu0 %v586_v9 }
  0x27   : > { %372 = vmatprep.subr.bf16.mxu0 %v616_v1 }
  0x2a   : > { %373 = vmatpush1.bf16.msra.mxu0 %v587_v10 }
  0x2b   : > { %382 = vmatprep.subr.bf16.mxu0 %v616_v1 }
  0x2e   : > { %383 = vmatpush2.bf16.msra.mxu0 %v588_v11 }
  0x2f   : > { %384 = vmatprep.subr.bf16.mxu0 %v616_v1 }
  0x32   : > { %385 = vmatpush2.bf16.msra.mxu0 %v589_v12 }
  0x33   : > { %386 = vmatprep.subr.bf16.mxu0 %v616_v1 }
  0x36   : > { %387 = vmatpush2.bf16.msra.mxu0 %v590_v13 }
  0x37   : > { %388 = vmatprep.subr.bf16.mxu0 %v616_v1 }
  0x3a   : > { %389 = vmatpush2.bf16.msra.mxu0 %v591_v14 }
  0x3d   : > { %391 = vmatmul.mubr.bf16.vlgmr.msra.gmra.mxu0 %v538_v5 }
  0xfd   : > { %v392_v16 = vpop.f32.mrf.mxu0 }
  0xfe   : > { %v393_v17 = vadd.f32 %v537_v15, %v392_v16 }
  0xff   : > { %v394_v18 = vpop.f32.mrf.mxu0 }
 0x100   : > { %v398_v19 = vmax.f32 %v393_v17, 0.0 }
 0x101   : > { %v395_v20 = vpop.f32.mrf.mxu0 }
 0x102   : > { %v399_v21 = vpack.c.bf16 %v398_v19, %v398_v19  ;;  %v403_v22 = vsel %vm402_vm1, %v398_v19, 0.0 }
 0x103   : > { %v404_v23 = vrot.slane %v403_v22, 4  ;;  %v396_v24 = vpop.f32.mrf.mxu0 }
 0x104   : > { %401 = vst.msk [vmem:[%s235_s30] sm:$0x3] %vm400_vm2, %v399_v21 }
 0x105   : > { %v405_v25 = vadd.f32 %v404_v23, %v403_v22 }
 0x107   : > { %v406_v26 = vrot.slane %v405_v25, 2 }
 0x109   : > { %v407_v27 = vadd.f32 %v406_v26, %v405_v25 }
 0x10b   : > { %v408_v28 = vrot.slane %v407_v27, 1 }
 0x10d   : > { %v409_v29 = vadd.f32 %v408_v28, %v407_v27 }
 0x10f   : > { %415 = vst.msk [vmem:[%s238_s7] sm:$0x1] %vm414_vm3, %v409_v29 }
 0x110 PF: > { %s15_s17 = sadd.s32 1, %s614_s17   ;;  %s727_s15 = smov %s610_s16 }
 0x111   : > { %p12_p5 = scmp.ge.s32.totalorder %s15_s17, 4   ;;  %s728_s16 = smov %s730_s18 }
 0x113   :  { %14 = sbr.rel (!%p12_p5) target bundleno = 2 (0x2), region = 82 }

// kernel: pspnet_forward.5
= control target key start
LH: loop header
LB: loop body
LE: loop exit
PB: predicated region body
PF: predicated region fallthrough
CT: control target
= control target key end

     0   :  { %v229_v0 = vmov 0.0   ;;  %vm230_vm0 = vmmov 0   ;;  %vm33_vm1 = vcmask 261120   ;;  %vm117_vm2 = vcmask 130048   ;;  %s291_s1 = inlined_call_operand.vmem [shape: f32[32,16], index: 1, kind: input, shape index: {}]   ;;  %s292_s0 = inlined_call_operand.vmem [shape: f32[2,32], index: 0, kind: input, shape index: {}]   ;;  %s293_s3 = inlined_call_operand.vmem [shape: f32[16,32], index: 3, kind: input, shape index: {}]   ;;  %s294_s2 = inlined_call_operand.vmem [shape: f32[1,16], index: 2, kind: input, shape index: {}]   ;;  %s295_s4 = inlined_call_operand.vmem [shape: f32[1,32], index: 4, kind: input, shape index: {}]   ;;  %s296_s5 = inlined_call_operand.vmem [shape: f32[2,32], index: 5, kind: output, shape index: {}]  }
   0x1   :  { %209 = vmatprep.subr.mxu0 %v229_v0  ;;  %v25_v1 = vld [vmem:[%s291_s1 + $0x18] sm:$0xff]  ;;  %v24_v2 = vld [vmem:[%s291_s1 + $0x10] sm:$0xff]  ;;  %217 = vmatprep.mubr.msk.f32.mxu0 %vm230_vm0, %v229_v0  ;;  %v20_v3 = vld [vmem:[%s292_s0] sm:$0x3]  ;;  %vm191_vm3 = vcmask 254976  }
   0x2   :  { %210 = vmatpush3.msra.mxu0 %v25_v1  ;;  %220 = vmatprep.subr.mxu1 %v229_v0  ;;  %v23_v4 = vld [vmem:[%s291_s1 + $0x8] sm:$0xff]  ;;  %v22_v5 = vld [vmem:[%s291_s1] sm:$0xff]  ;;  %v21_v6 = vmul.f32 0.25, %v20_v3 }
   0x3   :  { %211 = vmatprep.subr.mxu0 %v229_v0  ;;  %224 = vmatprep.mubr.msk.f32.mxu1 %vm230_vm0, %v229_v0  ;;  %v109_v7 = vld [vmem:[%s293_s3 + $0x8] sm:$0xff]  ;;  %v108_v8 = vld [vmem:[%s293_s3] sm:$0xff] }
   0x4   :  { %212 = vmatpush3.msra.mxu0 %v24_v2  ;;  %221 = vmatpush3.msra.mxu1 %v109_v7  ;;  %v197_v9 = vld [vmem:[%s294_s2] ss:$0 sm:$0xff] }
   0x5   :  { %213 = vmatprep.subr.mxu0 %v229_v0  ;;  %222 = vmatprep.subr.mxu1 %v229_v0  ;;  %v199_v14 = vld [vmem:[%s295_s4] ss:$0 sm:$0xff] }
   0x6   :  { %214 = vmatpush3.msra.mxu0 %v23_v4  ;;  %223 = vmatpush3.msra.mxu1 %v108_v8 }
   0x7   :  { %215 = vmatprep.subr.mxu0 %v229_v0 }
   0x8   :  { %216 = vmatpush3.msra.mxu0 %v22_v5 }
   0x9   :  { %218 = vmatmul.mubr.msk.f32.vlgmr.msra.gmra.mxu0 %vm33_vm1, %v21_v6 }
  0xc9   :  { %v103_v10 = vpop.f32.mrf.mxu0 }
  0xca   :  { %v104_v11 = vadd.f32 %v197_v9, %v103_v10 }
  0xcb   :  { %v219_v12 = vpop.f32.mrf.mxu0 }
  0xcc   :  { %v107_v13 = vmax.f32 %v104_v11, 0.0 }
  0xce   :  { %225 = vmatmul.mubr.msk.f32.vlgmr.msra.gmra.mxu1 %vm117_vm2, %v107_v13 }
 0x18e   :  { %v187_v15 = vpop.f32.mrf.mxu1 }
 0x18f   :  { %v188_v16 = vadd.f32 %v199_v14, %v187_v15 }
 0x190   :  { %v226_v17 = vpop.f32.mrf.mxu1 }
 0x191   :  { %192 = vst.msk [vmem:[%s296_s5] sm:$0x3] %vm191_vm3, %v188_v16 }

// kernel: pspnet_forward.6
= control target key start
LH: loop header
LB: loop body
LE: loop exit
PB: predicated region body
PF: predicated region fallthrough
CT: control target
= control target key end

     0   :  { %s644_s18 = smov 0   ;;  %s646_s19 = smov 0   ;;  %s702_s0 = inlined_call_operand.vmem [shape: bf16[2,4,32], index: 0, kind: input, shape index: {}]   ;;  %s703_s1 = inlined_call_operand.vmem [shape: f32[2,1,32], index: 1, kind: input, shape index: {}]   ;;  %s704_s2 = inlined_call_operand.vmem [shape: bf16[32,32], index: 2, kind: input, shape index: {}]   ;;  %s705_s3 = inlined_call_operand.vmem [shape: bf16[32,4], index: 3, kind: input, shape index: {}]   ;;  %s706_s4 = inlined_call_operand.vmem [shape: f32[1,4], index: 4, kind: input, shape index: {}]   ;;  %s707_s5 = inlined_call_operand.vmem [shape: f32[2,4,4], index: 5, kind: output, shape index: {}]  }
   0x1   :  { %s648_s20 = smov 0  }
   0x2 LB: > { %s27_s21 = sadd.s32 1, %s606_s19  ;;  %p523_p0 = scmp.ge.s32.totalorder %s610_s20, 1  ;;  %s610_s20 = sphi %s648_s20, %s15_s20   ;;  %s606_s19 = sphi %s646_s19, %s709_s19   ;;  %s602_s18 = sphi %s644_s18, %s708_s18  }
   0x3   : > { %p29_p1 = scmp.ge.s32.totalorder %s27_s21, 2  ;;  %p213_p2 = scmp.lt.s32.totalorder %s610_s20, 3 }
   0x5   : > { %s711_s21 = smov (%p29_p1, %s27_s21), 0  ;;  %p214_p3 = pnand %p523_p0, %p213_p2 }
   0x6   : > { %p248_p4 = scmp.lt.s32.totalorder (!%p214_p3), %s602_s18, 1 }
   0x7   : > { %217 = sbr.rel (%p214_p3) target bundleno = 541 (0x21d), region = 40 }
   0xc   : > { %v584_v0 = vld [vmem:[%s704_s2 + $0x8] sm:$0xff]   ;;  %v612_v1 = vmov 0.0   ;;  %v585_v2 = vld [vmem:[%s704_s2] sm:$0xff]   ;;  %vm613_vm0 = vmmov 0   ;;  %s713_s18 = smov (!%p248_p4, %s602_s18), 1  ;;  %vm290_vm1 = vcmask 261120  }
   0xd   : > { %542 = vmatprep.subr.bf16.mxu0 %v612_v1  ;;  %550 = vmatprep.subr.bf16.mxu1 %v612_v1  ;;  %s524_s26 = sshll.u32 %s713_s18, 1  ;;  %v586_v4 = vld [vmem:[%s705_s3 + $0x8] sm:$0xff]   ;;  %v587_v5 = vld [vmem:[%s705_s3] sm:$0xff]   ;;  %s257_s11 = scalar_lea.vmem %s703_s1, %s713_s18  ;;  %vm434_vm2 = vcmask 27648  }
   0xe   : > { %543 = vmatpush3.bf16.msra.mxu0 %v584_v0  ;;  %546 = vmatprep.mubr.msk.bf16.mxu0 %vm613_vm0, %v612_v1  ;;  %s254_s29 = scalar_lea.vmem %s702_s0, %s524_s26  ;;  %v526_v6 = vld [vmem:[%s257_s11] ss:$0 sm:$0xff]  ;;  %s525_s14 = sshll.u32 %s713_s18, 2 }
   0xf   : > { %544 = vmatprep.subr.bf16.mxu0 %v612_v1  ;;  %554 = vmatprep.mubr.msk.bf16.mxu1 %vm613_vm0, %v612_v1  ;;  %v266_v3 = vld [vmem:[%s254_s29] sm:$0x3]  ;;  %s264_s17 = scalar_lea.vmem %s707_s5, %s525_s14 }
  0x10   : > { %551 = vmatpush3.bf16.msra.mxu1 %v586_v4  ;;  %v530_v14 = vld [vmem:[%s706_s4] ss:$0 sm:$0xff] }
  0x11   : > { %552 = vmatprep.subr.bf16.mxu1 %v612_v1 }
  0x12   : > { %545 = vmatpush3.bf16.msra.mxu0 %v585_v2 }
  0x14   : > { %553 = vmatpush3.bf16.msra.mxu1 %v587_v5 }
  0x15   : > { %547 = vmatmul.mubr.msk.bf16.vlgmr.msra.gmra.mxu0 %vm290_vm1, %v266_v3 }
  0xd5   : > { %v328_v7 = vpop.f32.mrf.mxu0 }
  0xd6   : > { %v329_v8 = vadd.f32 %v526_v6, %v328_v7 }
  0xd7   : > { %v548_v9 = vpop.f32.mrf.mxu0 }
  0xd8   : > { %v334_v10 = vmax.f32 %v329_v8, 0.0 }
  0xd9   : > { %v331_v11 = vpop.f32.mrf.mxu0 }
  0xda   : > { %v335_v12 = vpack.c.bf16 %v334_v10, %v334_v10 }
  0xdb   : > { %v549_v13 = vpop.f32.mrf.mxu0 }
  0xdc   : > { %555 = vmatmul.mubr.msk.bf16.vlgmr.msra.gmra.mxu1 %vm290_vm1, %v335_v12 }
 0x19c   : > { %v396_v15 = vpop.f32.mrf.mxu1 }
 0x19d   : > { %v397_v16 = vadd.f32 %v530_v14, %v396_v15 }
 0x19e   : > { %v556_v17 = vpop.f32.mrf.mxu1 }
 0x19f   : > { %402 = vxpose.xlu0.b32.start.end [1/1] (short) (narrow) %v397_v16, 8 }
 0x1a0   : > { %v399_v18 = vpop.f32.mrf.mxu1 }
 0x1a2   : > { %v557_v19 = vpop.f32.mrf.mxu1 }
 0x21b   : > { %v418_v20 = vpop.trf.xlu0 }
 0x21c   : > { %435 = vst.msk [vmem:[%s264_s17] sm:$0xf] %vm434_vm2, %v418_v20 }
 0x21d PF: > { %s15_s20 = sadd.s32 1, %s610_s20   ;;  %s708_s18 = smov %s606_s19 }
 0x21e   : > { %p12_p5 = scmp.ge.s32.totalorder %s15_s20, 4   ;;  %s709_s19 = smov %s711_s21 }
 0x220   :  { %14 = sbr.rel (!%p12_p5) target bundleno = 2 (0x2), region = 73 }

// kernel: pspnet_forward.7
= control target key start
LH: loop header
LB: loop body
LE: loop exit
PB: predicated region body
PF: predicated region fallthrough
CT: control target
= control target key end

     0   :  { %8 = vsyncpa [#allocation3], 0  ;;  %s847_s0 = inlined_call_operand.vmem [shape: f32[2,4,2,2], index: 0, kind: input, shape index: {}]   ;;  %s848_s1 = inlined_call_operand.vmem [shape: f32[16,2], index: 1, kind: input, shape index: {}]   ;;  %s849_s2 = inlined_call_operand.vmem [shape: f32[2,16], index: 2, kind: input, shape index: {}]   ;;  %s850_s3 = inlined_call_operand.hbm [shape: f32[2,4,16,16], index: 3, kind: output, shape index: {}]  }
   0x1   :  { %10 = vsyncpa [#allocation3 + $0x1], 0  ;;  %s695_s12 = smov 0   ;;  %s697_s13 = smov 0  }
   0x2   :  { %s699_s14 = smov 0   ;;  %s701_s15 = smov 0  }
   0x3   :  { %s703_s16 = smov 0   ;;  %s705_s17 = smov 0  }
   0x4   :  { %s707_s18 = smov 0   ;;  %s709_s19 = smov 0  }
   0x5 LB: > { %s469_s20 = sadd.s32 4294967295, %s670_s19   ;;  %s470_s21 = sadd.s32 4294967294, %s670_s19   ;;  %s670_s19 = sphi %s709_s19, %s16_s19   ;;  %s666_s18 = sphi %s707_s18, %s859_s18   ;;  %s662_s17 = sphi %s705_s17, %s858_s17   ;;  %s658_s16 = sphi %s703_s16, %s857_s16   ;;  %s654_s15 = sphi %s701_s15, %s856_s15   ;;  %s650_s14 = sphi %s699_s14, %s855_s14   ;;  %s646_s13 = sphi %s697_s13, %s854_s13   ;;  %s642_s12 = sphi %s695_s12, %s853_s12  }
   0x6   : > { %s25_s22 = sadd.s32 1, %s662_s17  ;;  %s28_s23 = sadd.s32 1, %s666_s18 }
   0x7   : > { %p26_p0 = scmp.ge.s32.totalorder %s25_s22, 4  ;;  %p117_p1 = scmp.ne.s32.totalorder %s650_s14, %s646_s13 }
   0x8   : > { %p118_p2 = scmp.eq.s32.totalorder %s469_s20, 7  ;;  %p123_p5 = scmp.ne.s32.totalorder %s646_s13, %s642_s12 }
   0x9   : > { %s861_s22 = smov (%p26_p0, %s25_s22), 0  ;;  %s863_s23 = smov (!%p26_p0, %s28_s23), %s666_s18 }
   0xa   : > { %s103_s24 = ssub.s32 %s662_s17, %s861_s22  ;;  %p746_p3 = por %p118_p2, %p117_p1 }
   0xb   : > { %p30_p4 = scmp.ge.s32.totalorder %s863_s23, 2  ;;  %p124_p6 = scmp.eq.s32.totalorder %s470_s21, 7 }
   0xc   : > { %p473_p7 = scmp.ge.s32.totalorder %s670_s19, 1  ;;  %p159_p9 = scmp.lt.s32.totalorder %s670_s19, 9 }
   0xd   : > { %s865_s23 = smov (%p30_p4, %s863_s23), 0  ;;  %p755_p8 = por %p124_p6, %p123_p5 }
   0xe   : > { %s102_s27 = ssub.s32 %s666_s18, %s865_s23  ;;  %s107_s28 = sadd.s32 1, %s650_s14 }
   0xf   : > { %s104_s29 = sor.u32 %s103_s24, %s102_s27  ;;  %p160_p10 = pnand %p473_p7, %p159_p9 }
  0x10   : > { %p105_p11 = scmp.eq.s32.totalorder %s104_s29, 0  ;;  %p186_p12 = scmp.lt.s32.totalorder (!%p160_p10), %s658_s16, 1 }
  0x11   : > { %163 = sbr.rel (%p160_p10) target bundleno = 436 (0x1b4), region = 32  ;;  %p188_p13 = scmp.lt.s32.totalorder (!%p160_p10), %s654_s15, 3 }
  0x12   : > { %s764_s30 = scalar_select %p105_p11, %s650_s14, %s107_s28  }
  0x13   : > { %s183_s4 = sand.u32 (!%p160_p10), 1, %s646_s13   ;;  %s672_s27 = smov (!%p160_p10), [#allocation2]  }
  0x14   : > { %s474_s5 = sshll.u32 (!%p160_p10), %s183_s4, 4  ;;  %s582_s28 = sshll.u32 (!%p160_p10), %s672_s27, 4  ;;  %s583_s28 = int_to_ptr.vmem [resolvable:$false] %s582_s28 }
  0x15   : > { %s584_s29 = scalar_lea.vmem (!%p160_p10), %s583_s28, 512 }
  0x16   : > { %v194_v0 = vld [vmem:[%s848_s1] sm:$0xff]  ;;  %vm197_vm0 = vcmask 15360   ;;  %s187_s6 = scalar_select %p186_p12, %s658_s16, 1  ;;  %vm204_vm1 = vcmask 1041408   ;;  %v195_v2 = vld [vmem:[%s848_s1 + $0x8] sm:$0xff]  ;;  %vm368_vm2 = vcmask 130048  }
  0x17   : > { %497 = vmatprep.mubr.msk.f32.mxu0 %vm197_vm0, %v194_v0  ;;  %s189_s7 = scalar_select %p188_p13, %s654_s15, 3  ;;  %v283_v3 = vld [vmem:[%s849_s2] sm:$0x3] }
  0x18   : > { %s475_s8 = sshll.u32 %s187_s6, 2  ;;  %500 = vmatprep.subr.msk.mxu1 %vm204_vm1, %v283_v3  ;;  %s484_s6 = sshll.u32 %s654_s15, 1 }
  0x19   : > { %s191_s9 = sadd.s32 %s475_s8, %s189_s7  ;;  %501 = vmatpush3.msk.msra.mxu1 %vm204_vm1, %v283_v3  ;;  %s485_s7 = sshll.u32 %s658_s16, 3 }
  0x1a   : > { %s476_s10 = sshll.u32 %s191_s9, 1  ;;  %s384_s8 = sadd.s32 %s485_s7, %s484_s6 }
  0x1b   : > { %s193_s21 = scalar_lea.vmem %s847_s0, %s476_s10  ;;  %s185_s9 = scalar_lea.vmem [#allocation2], %s474_s5 }
  0x1c   : > { %v196_v1 = vld [vmem:[%s193_s21] sm:$0x3]  ;;  %s387_s10 = sshll.u32 %s185_s9, 4  ;;  %s486_s11 = sshll.u32 %s384_s8, 7  ;;  %s789_s10 = int_to_ptr.vmem [resolvable:$true] %s387_s10 }
  0x1d   : > { %495 = vmatprep.subr.msk.mxu0 %vm204_vm1, %v196_v1  ;;  %s794_s24 = scalar_lea.hbm %s850_s3, %s486_s11  ;;  %s796_s15 = scalar_lea.sflag [#allocation3], %s183_s4 }
  0x1e   : > { %496 = vmatpush3.msk.msra.mxu0 %vm204_vm1, %v196_v1  ;;  %s578_s16 = scalar_lea.vmem %s789_s10, 256  ;;  %p585_p4 = scmp.lt.s32.totalorder %s789_s10, %s583_s28 }
  0x1f   : > { %498 = vmatmul.mubr.msk.f32.vlgmr.msra.gmra.mxu0 %vm197_vm0, %v195_v2  ;;  %p579_p0 = scmp.ne.s32.totalorder %s789_s10, %s578_s16  ;;  %p586_p5 = scmp.lt.s32.totalorder %s584_s29, %s578_s16 }
  0x21   : > { %p580_p1 = pnand %p579_p0, %p746_p3  ;;  %p587_p6 = por %p586_p5, %p585_p4 }
  0x23   : > { %p581_p2 = pneg %p580_p1 }
  0x25   : > { %p588_p7 = pnand %p587_p6, %p581_p2 }
  0xdf   : > { %v499_v4 = vpop.f32.mrf.mxu0 }
  0xe1   : > { %v274_v5 = vpop.f32.mrf.mxu0 }
  0xe2   : > { %502 = vmatprep.mubr.msk.f32.mxu1 %vm197_vm0, %v274_v5 }
  0xe3   : > { %503 = vmatmul.mubr.msk.f32.vlgmr.msra.gmra.mxu1 %vm197_vm0, %v499_v4 }
 0x1a3   : > { %v504_v6 = vpop.f32.mrf.mxu1 }
 0x1a4   : > { %370 = vst.msk [vmem:[%s185_s9 + $0x8] sm:$0xff] %vm368_vm2, %v504_v6 }
 0x1a5   : > { %v359_v7 = vpop.f32.mrf.mxu1 }
 0x1a6   : > { %369 = vst.msk [vmem:[%s185_s9] sm:$0xff] %vm368_vm2, %v359_v7 }
 0x1a7   : > { %591 = shalt.err (!%p588_p7)
}
 0x1a8   : > { %s592_s4 = scalar_lea.hbm %s794_s24, 256  ;;  %s596_s7 = scalar_lea.hbm %s850_s3, 2048 }
 0x1a9   : > { %p593_p9 = scmp.ne.s32.totalorder %s794_s24, %s592_s4  ;;  %p597_p12 = scmp.lt.s32.totalorder %s794_s24, %s850_s3 }
 0x1aa   : > { %p598_p13 = scmp.lt.s32.totalorder %s596_s7, %s592_s4 }
 0x1ab   : > { %p594_p10 = pnand %p593_p9, %p746_p3 }
 0x1ac   : > { %p599_p0 = por %p598_p13, %p597_p12 }
 0x1ad   : > { %p595_p11 = pneg %p594_p10 }
 0x1af   : > { %p600_p1 = pnand %p599_p0, %p595_p11 }
 0x1b1   : > { %603 = shalt.err (!%p600_p1)
}
 0x1b2   : > { %s673_s11 = smov 128   ;;  %s674_s20 = smov 8  }
 0x1b3   : > { %505 = dma.vmem_to_hbm [thread:$0]  (%p746_p3), %s789_s10, 256, %s794_s24, %s796_s15, %s673_s11, %s673_s11, %s674_s20  }
 0x1b4 PF: > { %p511_p2 = scmp.ge.s32.totalorder %s670_s19, 2  ;;  %s402_s21 = sand.u32 1, %s642_s12  }
 0x1b5   : > { %s403_s16 = scalar_lea.sflag [#allocation3], %s402_s21 }
 0x1b6   : > { %p508_p4 = pnand %p511_p2, %p755_p8 }
 0x1b8   : > { %p509_p5 = pneg %p508_p4 }
 0x1ba   : > { %637 = dma.done.wait (%p509_p5), %s403_s16, 256  }
 0x1bb   : > { %639 = vsyncadd (%p509_p5), %s403_s16, 4294967040  ;;  %s16_s19 = sadd.s32 1, %s670_s19   ;;  %s853_s12 = smov %s646_s13 }
 0x1bc   : > { %p13_p6 = scmp.ge.s32.totalorder %s16_s19, 10   ;;  %s854_s13 = smov %s650_s14 }
 0x1bd   : > { %s855_s14 = smov %s764_s30  ;;  %s856_s15 = smov %s662_s17 }
 0x1be   : > { %s857_s16 = smov %s666_s18  ;;  %s858_s17 = smov %s861_s22 }
 0x1bf   : > { %s859_s18 = smov %s865_s23  ;;  %15 = sbr.rel (!%p13_p6) target bundleno = 5 (0x5), region = 67 }
 0x1c4   :  { %408 = vsyncpa [#allocation3], 1 }
 0x1c5   :  { %410 = vsyncpa [#allocation3 + $0x1], 1 }

</bundles_post_ra>
